<compile_context>
chip_gen: v5e
topology: v5e:2x2
jax: 0.10.0
libtpu: 0.0.40
codegen_flags: <defaults>
</compile_context>

<pallas_src>
import functools

import jax
import jax.numpy as jnp
from jax.experimental import pallas as pl
from jax.experimental.pallas import tpu as pltpu

_LANE = 128


def _round_up(n, m):
    return ((n + m - 1) // m) * m


def _mlp_ln_kernel(num_linear, eps, *refs):
    """refs = (x_ref, w0, b0, w1, b1, ..., gamma, beta, out_ref).

    Hidden feature dims are zero-padded to multiples of 128 (pad weight columns and pad
    biases are zero, so pad lanes of hidden activations are exactly zero and contribute
    nothing to the next matmul). The final layer's output dim is NOT padded, so the
    LayerNorm is a plain row-wise mean / centered variance over the true out_dim.
    """
    x_ref = refs[0]
    out_ref = refs[-1]
    p = refs[1:-1]

    h = x_ref[...].astype(jnp.float32)
    for i in range(num_linear):
        w = p[2 * i][...]                                    # matmul dtype (bf16 or f32)
        b = p[2 * i + 1][...].astype(jnp.float32)            # (1, do_pad), f32
        # Cast activations to the weight dtype only for the MXU push; accumulate in f32.
        h = jnp.dot(h.astype(w.dtype), w, preferred_element_type=jnp.float32) + b
        if i < num_linear - 1:                               # ReLU on hidden layers only
            h = jnp.maximum(h, 0.0)
        # TODO(synk): on v6e/v7x the hidden-layer bias-add + ReLU could run in bf16
        # (native bf16 VALU); kept f32 so the identical code path is exact on v5e.

    gamma = p[-2][...].astype(jnp.float32)                   # (1, out_dim)
    beta = p[-1][...].astype(jnp.float32)                    # (1, out_dim)
    mean = jnp.mean(h, axis=-1, keepdims=True)
    c = h - mean
    var = jnp.mean(c * c, axis=-1, keepdims=True)            # centered -> no cancellation
    y = c * jax.lax.rsqrt(var + eps) * gamma + beta
    out_ref[...] = y.astype(out_ref.dtype)


def _pick_tile_rows(tile_rows, n_rows, dims_pad, in_dim, out_dim,
                    x_itemsize, out_itemsize, mm_itemsize):
    """Row-tile selection: 128-multiple, clamped to the row count, >=2 grid steps when
    possible (v7x megacore), and capped so the working set fits comfortably in VMEM."""
    tile_rows = max(_LANE, _round_up(tile_rows, _LANE))
    tile_rows = min(tile_rows, _round_up(max(n_rows, 1), _LANE))
    if n_rows > _LANE:
        tile_rows = min(tile_rows, _round_up(pl.cdiv(n_rows, 2), _LANE))

    def vmem_est(tr):
        act = 3 * tr * max(dims_pad) * 4                      # live f32 intermediates
        io = 2 * tr * in_dim * x_itemsize + 2 * tr * out_dim * out_itemsize
        par = 0
        for di, do in zip(dims_pad[:-1], dims_pad[1:]):
            par += 2 * (di * do * mm_itemsize + do * 4)       # double-buffered weights+bias
        par += 2 * 2 * out_dim * 4                            # gamma/beta
        return act + io + par

    while tile_rows > _LANE and vmem_est(tile_rows) > 24 * 2**20:
        tile_rows = max(_LANE, _round_up(tile_rows // 2, _LANE))
    return tile_rows, vmem_est(tile_rows)


def mlp_layernorm(x, weights, biases, gamma, beta, *, tile_rows=512, eps=1e-5,
                  use_bf16=True, out_dtype=None):
    """MLP (Linear+ReLU hidden layers, plain final Linear) + LayerNorm, fused in one kernel."""
    n_rows, in_dim = x.shape
    out_dim = weights[-1].shape[1]
    num_linear = len(weights)
    mm_dtype = jnp.bfloat16 if use_bf16 else jnp.float32
    if out_dtype is None:
        out_dtype = jnp.bfloat16 if use_bf16 else x.dtype

    # Pad only the *hidden* feature dims to lane multiples; input and output dims stay true.
    dims = [in_dim] + [w.shape[1] for w in weights]
    dims_pad = list(dims)
    for j in range(1, len(dims) - 1):
        dims_pad[j] = _round_up(dims[j], _LANE)

    tile_rows, vmem_est = _pick_tile_rows(
        tile_rows, n_rows, dims_pad, in_dim, out_dim,
        jnp.dtype(x.dtype).itemsize, jnp.dtype(out_dtype).itemsize,
        jnp.dtype(mm_dtype).itemsize)

    operands = [x]                                            # x stays unpadded / uncast in HBM
    in_specs = [pl.BlockSpec((tile_rows, in_dim), lambda i: (i, 0))]
    for li, (w, b) in enumerate(zip(weights, biases)):
        di, do = dims[li], dims[li + 1]
        di_p, do_p = dims_pad[li], dims_pad[li + 1]
        wp = jnp.pad(w, ((0, di_p - di), (0, do_p - do))).astype(mm_dtype)
        bp = jnp.pad(b, (0, do_p - do)).reshape(1, -1).astype(jnp.float32)
        operands += [wp, bp]
        in_specs += [pl.BlockSpec((di_p, do_p), lambda i: (0, 0)),
                     pl.BlockSpec((1, do_p), lambda i: (0, 0))]
    operands += [gamma.reshape(1, -1).astype(jnp.float32),
                 beta.reshape(1, -1).astype(jnp.float32)]
    in_specs += [pl.BlockSpec((1, out_dim), lambda i: (0, 0)),
                 pl.BlockSpec((1, out_dim), lambda i: (0, 0))]

    kernel = functools.partial(_mlp_ln_kernel, num_linear, eps)
    vmem_limit = int(min(48 * 2**20, max(32 * 2**20, 2 * vmem_est)))
    return pl.pallas_call(
        kernel,
        out_shape=jax.ShapeDtypeStruct((n_rows, out_dim), out_dtype),
        grid=(pl.cdiv(n_rows, tile_rows),),
        in_specs=in_specs,
        out_specs=pl.BlockSpec((tile_rows, out_dim), lambda i: (i, 0)),
        compiler_params=pltpu.CompilerParams(
            dimension_semantics=("parallel",),
            vmem_limit_bytes=vmem_limit),
    )(*operands)


def _init_mlp_ln_params(key, in_dim, hidden_list, out_dim):
    """Deterministic param init: weights stored as (in, out) for x @ W."""
    dims = [in_dim] + list(hidden_list) + [out_dim]
    weights, biases = [], []
    for d_in, d_out in zip(dims[:-1], dims[1:]):
        key, kw, kb = jax.random.split(key, 3)
        bound = 1.0 / jnp.sqrt(d_in)
        weights.append(jax.random.uniform(kw, (d_in, d_out), jnp.float32, -bound, bound))
        biases.append(jax.random.uniform(kb, (d_out,), jnp.float32, -bound, bound))
    gamma = jnp.ones((out_dim,), jnp.float32)
    beta = jnp.zeros((out_dim,), jnp.float32)
    return weights, biases, gamma, beta


class Encoder:
    """JAX/Pallas equivalent of the PyTorch Encoder module."""

    def __init__(self, node_in, node_out, edge_in, edge_out, mlp_layers, mlp_hidden, key,
                 *, tile_rows=512, use_bf16=True, out_dtype=None):
        k_node, k_edge = jax.random.split(key)
        hidden = [mlp_hidden] * mlp_layers
        self.node_params = _init_mlp_ln_params(k_node, node_in, hidden, node_out)
        self.edge_params = _init_mlp_ln_params(k_edge, edge_in, hidden, edge_out)
        self.tile_rows = tile_rows
        self.use_bf16 = use_bf16
        self.out_dtype = out_dtype

    def __call__(self, x, edge_index, e_features):
        # edge_index is unused by the Encoder forward (same as the PyTorch module).
        nw, nb, ng, nbeta = self.node_params
        ew, eb, eg, ebeta = self.edge_params
        node_out = mlp_layernorm(x, nw, nb, ng, nbeta, tile_rows=self.tile_rows,
                                 use_bf16=self.use_bf16, out_dtype=self.out_dtype)
        edge_out = mlp_layernorm(e_features, ew, eb, eg, ebeta, tile_rows=self.tile_rows,
                                 use_bf16=self.use_bf16, out_dtype=self.out_dtype)
        return node_out, edge_out


def _ref_mlp_ln(x, weights, biases, gamma, beta, eps=1e-5, mm_dtype=jnp.float32):
    """Pure-JAX reference; mm_dtype mimics the matmul input precision of the kernel."""
    h = x.astype(jnp.float32)
    for i, (w, b) in enumerate(zip(weights, biases)):
        h = jnp.dot(h.astype(mm_dtype), w.astype(mm_dtype),
                    preferred_element_type=jnp.float32) + b
        if i < len(weights) - 1:
            h = jnp.maximum(h, 0.0)
    mean = jnp.mean(h, axis=-1, keepdims=True)
    var = jnp.mean((h - mean) ** 2, axis=-1, keepdims=True)
    return (h - mean) * jax.lax.rsqrt(var + eps) * gamma + beta


if __name__ == "__main__":
    key = jax.random.PRNGKey(0)
    k_params, k_x, k_e, k_ei = jax.random.split(key, 4)

    # Small, module-consistent shapes.
    num_nodes, num_edges = 16, 32
    node_in, node_out = 8, 32
    edge_in, edge_out = 12, 32
    mlp_layers, mlp_hidden = 2, 32

    enc = Encoder(node_in, node_out, edge_in, edge_out, mlp_layers, mlp_hidden, k_params)

    x = jax.random.normal(k_x, (num_nodes, node_in), jnp.float32)
    e_features = jax.random.normal(k_e, (num_edges, edge_in), jnp.float32)
    edge_index = jax.random.randint(k_ei, (2, num_edges), 0, num_nodes, jnp.int32)

    # Default path: bf16 matmuls, f32 accumulation/epilogue, bf16 output.
    node_enc, edge_enc = enc(x, edge_index, e_features)
    jax.block_until_ready((node_enc, edge_enc))
    assert node_enc.shape == (num_nodes, node_out)
    assert edge_enc.shape == (num_edges, edge_out)

    nw, nb, ng, nbeta = enc.node_params
    ew, eb, eg, ebeta = enc.edge_params

    # bf16 path vs. a bf16-matmul f32 reference (tolerance covers the bf16 output store).
    node_ref_bf16 = _ref_mlp_ln(x, nw, nb, ng, nbeta, mm_dtype=jnp.bfloat16)
    edge_ref_bf16 = _ref_mlp_ln(e_features, ew, eb, eg, ebeta, mm_dtype=jnp.bfloat16)
    assert jnp.allclose(node_enc.astype(jnp.float32), node_ref_bf16, atol=3e-2, rtol=3e-2)
    assert jnp.allclose(edge_enc.astype(jnp.float32), edge_ref_bf16, atol=3e-2, rtol=3e-2)

    # Full-f32 path vs. the f32 reference (exact torch module semantics).
    node_f32 = mlp_layernorm(x, nw, nb, ng, nbeta, use_bf16=False)
    edge_f32 = mlp_layernorm(e_features, ew, eb, eg, ebeta, use_bf16=False)
    jax.block_until_ready((node_f32, edge_f32))
    node_ref = _ref_mlp_ln(x, nw, nb, ng, nbeta)
    edge_ref = _ref_mlp_ln(e_features, ew, eb, eg, ebeta)
    assert jnp.allclose(node_f32, node_ref, atol=5e-4, rtol=5e-4)
    assert jnp.allclose(edge_f32, edge_ref, atol=5e-4, rtol=5e-4)

    print("KERNEL_OK")
</pallas_src>

<mosaic_0001>
module attributes {stable_mosaic.version = 11 : i64} {
  func.func @_mlp_ln_kernel(%arg0: i32, %arg1: memref<128x8xf32, #tpu.memory_space<vmem>>, %arg2: memref<8x128xbf16, #tpu.memory_space<vmem>>, %arg3: memref<1x128xf32, #tpu.memory_space<vmem>>, %arg4: memref<128x128xbf16, #tpu.memory_space<vmem>>, %arg5: memref<1x128xf32, #tpu.memory_space<vmem>>, %arg6: memref<128x32xbf16, #tpu.memory_space<vmem>>, %arg7: memref<1x32xf32, #tpu.memory_space<vmem>>, %arg8: memref<1x32xf32, #tpu.memory_space<vmem>>, %arg9: memref<1x32xf32, #tpu.memory_space<vmem>>, %arg10: memref<128x32xbf16, #tpu.memory_space<vmem>>) attributes {dimension_semantics = [#tpu.dimension_semantics<parallel>], iteration_bounds = array<i64: 1>, scalar_prefetch = 0 : i64, scratch_operands = 0 : i64, tpu.core_type = #tpu.core_type<tc>, window_params = [{transform_indices = @transform_0, window_bounds = array<i64: 128, 8>}, {pipeline_mode = #tpu.pipeline_mode<synchronous>, transform_indices = @transform_1, window_bounds = array<i64: 8, 128>}, {pipeline_mode = #tpu.pipeline_mode<synchronous>, transform_indices = @transform_2, window_bounds = array<i64: 1, 128>}, {pipeline_mode = #tpu.pipeline_mode<synchronous>, transform_indices = @transform_3, window_bounds = array<i64: 128, 128>}, {pipeline_mode = #tpu.pipeline_mode<synchronous>, transform_indices = @transform_4, window_bounds = array<i64: 1, 128>}, {pipeline_mode = #tpu.pipeline_mode<synchronous>, transform_indices = @transform_5, window_bounds = array<i64: 128, 32>}, {pipeline_mode = #tpu.pipeline_mode<synchronous>, transform_indices = @transform_6, window_bounds = array<i64: 1, 32>}, {pipeline_mode = #tpu.pipeline_mode<synchronous>, transform_indices = @transform_7, window_bounds = array<i64: 1, 32>}, {pipeline_mode = #tpu.pipeline_mode<synchronous>, transform_indices = @transform_8, window_bounds = array<i64: 1, 32>}, {transform_indices = @transform_9, window_bounds = array<i64: 128, 32>}]} {
    %c0 = arith.constant 0 : index
    %c0_0 = arith.constant 0 : index
    %0 = vector.load %arg1[%c0, %c0_0] : memref<128x8xf32, #tpu.memory_space<vmem>>, vector<128x8xf32>
    %c0_1 = arith.constant 0 : index
    %c0_2 = arith.constant 0 : index
    %1 = vector.load %arg2[%c0_1, %c0_2] : memref<8x128xbf16, #tpu.memory_space<vmem>>, vector<8x128xbf16>
    %c0_3 = arith.constant 0 : index
    %c0_4 = arith.constant 0 : index
    %2 = vector.load %arg3[%c0_3, %c0_4] : memref<1x128xf32, #tpu.memory_space<vmem>>, vector<1x128xf32>
    %3 = arith.truncf %0 : vector<128x8xf32> to vector<128x8xbf16>
    %cst = arith.constant dense<0.000000e+00> : vector<128x128xf32>
    %4 = tpu.matmul %3, %1, %cst {dimension_numbers = #tpu.dot_dimension_numbers<[1], [0], [0], [1], [0, 0, 1, 1], [], []>} : vector<128x8xbf16>, vector<8x128xbf16>, vector<128x128xf32> -> vector<128x128xf32>
    %5 = vector.broadcast %2 : vector<1x128xf32> to vector<128x128xf32>
    %6 = arith.addf %4, %5 : vector<128x128xf32>
    %cst_5 = arith.constant 0.000000e+00 : f32
    %7 = vector.broadcast %cst_5 : f32 to vector<128x128xf32>
    %8 = arith.maximumf %6, %7 : vector<128x128xf32>
    %c0_6 = arith.constant 0 : index
    %c0_7 = arith.constant 0 : index
    %9 = vector.load %arg4[%c0_6, %c0_7] : memref<128x128xbf16, #tpu.memory_space<vmem>>, vector<128x128xbf16>
    %c0_8 = arith.constant 0 : index
    %c0_9 = arith.constant 0 : index
    %10 = vector.load %arg5[%c0_8, %c0_9] : memref<1x128xf32, #tpu.memory_space<vmem>>, vector<1x128xf32>
    %11 = arith.truncf %8 : vector<128x128xf32> to vector<128x128xbf16>
    %cst_10 = arith.constant dense<0.000000e+00> : vector<128x128xf32>
    %12 = tpu.matmul %11, %9, %cst_10 {dimension_numbers = #tpu.dot_dimension_numbers<[1], [0], [0], [1], [0, 0, 1, 1], [], []>} : vector<128x128xbf16>, vector<128x128xbf16>, vector<128x128xf32> -> vector<128x128xf32>
    %13 = vector.broadcast %10 : vector<1x128xf32> to vector<128x128xf32>
    %14 = arith.addf %12, %13 : vector<128x128xf32>
    %cst_11 = arith.constant 0.000000e+00 : f32
    %15 = vector.broadcast %cst_11 : f32 to vector<128x128xf32>
    %16 = arith.maximumf %14, %15 : vector<128x128xf32>
    %c0_12 = arith.constant 0 : index
    %c0_13 = arith.constant 0 : index
    %17 = vector.load %arg6[%c0_12, %c0_13] : memref<128x32xbf16, #tpu.memory_space<vmem>>, vector<128x32xbf16>
    %c0_14 = arith.constant 0 : index
    %c0_15 = arith.constant 0 : index
    %18 = vector.load %arg7[%c0_14, %c0_15] : memref<1x32xf32, #tpu.memory_space<vmem>>, vector<1x32xf32>
    %19 = arith.truncf %16 : vector<128x128xf32> to vector<128x128xbf16>
    %cst_16 = arith.constant dense<0.000000e+00> : vector<128x32xf32>
    %20 = tpu.matmul %19, %17, %cst_16 {dimension_numbers = #tpu.dot_dimension_numbers<[1], [0], [0], [1], [0, 0, 1, 1], [], []>} : vector<128x128xbf16>, vector<128x32xbf16>, vector<128x32xf32> -> vector<128x32xf32>
    %21 = vector.broadcast %18 : vector<1x32xf32> to vector<128x32xf32>
    %22 = arith.addf %20, %21 : vector<128x32xf32>
    %c0_17 = arith.constant 0 : index
    %c0_18 = arith.constant 0 : index
    %23 = vector.load %arg8[%c0_17, %c0_18] : memref<1x32xf32, #tpu.memory_space<vmem>>, vector<1x32xf32>
    %c0_19 = arith.constant 0 : index
    %c0_20 = arith.constant 0 : index
    %24 = vector.load %arg9[%c0_19, %c0_20] : memref<1x32xf32, #tpu.memory_space<vmem>>, vector<1x32xf32>
    %cst_21 = arith.constant dense<0.000000e+00> : vector<128xf32>
    %25 = vector.multi_reduction <add>, %22, %cst_21 [1] : vector<128x32xf32> to vector<128xf32>
    %26 = vector.shape_cast %25 : vector<128xf32> to vector<128x1xf32>
    %cst_22 = arith.constant 3.200000e+01 : f32
    %27 = vector.broadcast %cst_22 : f32 to vector<128x1xf32>
    %28 = arith.divf %26, %27 : vector<128x1xf32>
    %29 = vector.broadcast %28 : vector<128x1xf32> to vector<128x32xf32>
    %30 = arith.subf %22, %29 : vector<128x32xf32>
    %31 = arith.mulf %30, %30 : vector<128x32xf32>
    %cst_23 = arith.constant dense<0.000000e+00> : vector<128xf32>
    %32 = vector.multi_reduction <add>, %31, %cst_23 [1] : vector<128x32xf32> to vector<128xf32>
    %33 = vector.shape_cast %32 : vector<128xf32> to vector<128x1xf32>
    %cst_24 = arith.constant 3.200000e+01 : f32
    %34 = vector.broadcast %cst_24 : f32 to vector<128x1xf32>
    %35 = arith.divf %33, %34 : vector<128x1xf32>
    %cst_25 = arith.constant 9.99999974E-6 : f32
    %36 = vector.broadcast %cst_25 : f32 to vector<128x1xf32>
    %37 = arith.addf %35, %36 : vector<128x1xf32>
    %38 = math.rsqrt %37 : vector<128x1xf32>
    %39 = vector.broadcast %38 : vector<128x1xf32> to vector<128x32xf32>
    %40 = arith.mulf %30, %39 : vector<128x32xf32>
    %41 = vector.broadcast %23 : vector<1x32xf32> to vector<128x32xf32>
    %42 = arith.mulf %40, %41 : vector<128x32xf32>
    %43 = vector.broadcast %24 : vector<1x32xf32> to vector<128x32xf32>
    %44 = arith.addf %42, %43 : vector<128x32xf32>
    %45 = arith.truncf %44 : vector<128x32xf32> to vector<128x32xbf16>
    %c0_26 = arith.constant 0 : index
    %c0_27 = arith.constant 0 : index
    %46 = vector.load %arg10[%c0_26, %c0_27] : memref<128x32xbf16, #tpu.memory_space<vmem>>, vector<128x32xbf16>
    tpu.vector_store %arg10[%c0_26, %c0_27], %45 {strides = array<i32>} : memref<128x32xbf16, #tpu.memory_space<vmem>>, vector<128x32xbf16>,
    return
  }
  func.func @transform_0(%arg0: i32) -> (i32, i32) {
    %c0_i32 = arith.constant 0 : i32
    %c0_i32_0 = arith.constant 0 : i32
    return %arg0, %c0_i32 : i32, i32
  }
  func.func @transform_1(%arg0: i32) -> (i32, i32) {
    %c0_i32 = arith.constant 0 : i32
    %c0_i32_0 = arith.constant 0 : i32
    %c0_i32_1 = arith.constant 0 : i32
    return %c0_i32, %c0_i32_0 : i32, i32
  }
  func.func @transform_2(%arg0: i32) -> (i32, i32) {
    %c0_i32 = arith.constant 0 : i32
    %c0_i32_0 = arith.constant 0 : i32
    %c0_i32_1 = arith.constant 0 : i32
    return %c0_i32, %c0_i32_0 : i32, i32
  }
  func.func @transform_3(%arg0: i32) -> (i32, i32) {
    %c0_i32 = arith.constant 0 : i32
    %c0_i32_0 = arith.constant 0 : i32
    %c0_i32_1 = arith.constant 0 : i32
    return %c0_i32, %c0_i32_0 : i32, i32
  }
  func.func @transform_4(%arg0: i32) -> (i32, i32) {
    %c0_i32 = arith.constant 0 : i32
    %c0_i32_0 = arith.constant 0 : i32
    %c0_i32_1 = arith.constant 0 : i32
    return %c0_i32, %c0_i32_0 : i32, i32
  }
  func.func @transform_5(%arg0: i32) -> (i32, i32) {
    %c0_i32 = arith.constant 0 : i32
    %c0_i32_0 = arith.constant 0 : i32
    %c0_i32_1 = arith.constant 0 : i32
    return %c0_i32, %c0_i32_0 : i32, i32
  }
  func.func @transform_6(%arg0: i32) -> (i32, i32) {
    %c0_i32 = arith.constant 0 : i32
    %c0_i32_0 = arith.constant 0 : i32
    %c0_i32_1 = arith.constant 0 : i32
    return %c0_i32, %c0_i32_0 : i32, i32
  }
  func.func @transform_7(%arg0: i32) -> (i32, i32) {
    %c0_i32 = arith.constant 0 : i32
    %c0_i32_0 = arith.constant 0 : i32
    %c0_i32_1 = arith.constant 0 : i32
    return %c0_i32, %c0_i32_0 : i32, i32
  }
  func.func @transform_8(%arg0: i32) -> (i32, i32) {
    %c0_i32 = arith.constant 0 : i32
    %c0_i32_0 = arith.constant 0 : i32
    %c0_i32_1 = arith.constant 0 : i32
    return %c0_i32, %c0_i32_0 : i32, i32
  }
  func.func @transform_9(%arg0: i32) -> (i32, i32) {
    %c0_i32 = arith.constant 0 : i32
    %c0_i32_0 = arith.constant 0 : i32
    return %arg0, %c0_i32 : i32, i32
  }
}

</mosaic_0001>

<bundles_post_ra>
// kernel: tpu_custom_call.1
= control target key start
LH: loop header
LB: loop body
LE: loop exit
PB: predicated region body
PF: predicated region fallthrough
CT: control target
= control target key end

     0   :  { %14 = vsyncpa [#allocation3], 0  ;;  %vm88_vm0 = vcmask 1043456   ;;  %vm63_vm1 = vcmask 64512   ;;  %vm425_vm2 = vcmask 261120   ;;  %vm839_vm8 = vcmask 257024   ;;  %s1524_s0 = inlined_call_operand.vmem [shape: f32[16,8], index: 0, kind: input, shape index: {}]   ;;  %s1525_s1 = inlined_call_operand.vmem [shape: bf16[8,128], index: 1, kind: input, shape index: {}]   ;;  %s1526_s2 = inlined_call_operand.vmem [shape: f32[1,128], index: 2, kind: input, shape index: {}]   ;;  %s1527_s3 = inlined_call_operand.vmem [shape: bf16[128,128], index: 3, kind: input, shape index: {}]   ;;  %s1528_s4 = inlined_call_operand.vmem [shape: f32[1,128], index: 4, kind: input, shape index: {}]   ;;  %s1529_s5 = inlined_call_operand.vmem [shape: bf16[128,32], index: 5, kind: input, shape index: {}]   ;;  %s1530_s6 = inlined_call_operand.vmem [shape: f32[1,32], index: 6, kind: input, shape index: {}]   ;;  %s1531_s7 = inlined_call_operand.vmem [shape: f32[1,32], index: 7, kind: input, shape index: {}]   ;;  %s1532_s8 = inlined_call_operand.vmem [shape: f32[1,32], index: 8, kind: input, shape index: {}]   ;;  %s1533_s9 = inlined_call_operand.hbm [shape: bf16[16,32], index: 9, kind: output, shape index: {}]  }
   0x1   :  { %v50_v0 = vld [vmem:[%s1525_s1] sm:$0xf]  ;;  %v35_v3 = vld [vmem:[%s1524_s0 + $0x8] sm:$0xff]  ;;  %v36_v5 = vld [vmem:[%s1524_s0 + $0x10] sm:$0xff] }
   0x2   :  { %v34_v1 = vld [vmem:[%s1524_s0] sm:$0xff]  ;;  %v90_v2 = vsel %vm88_vm0, %v50_v0, 0  ;;  %v37_v6 = vld [vmem:[%s1524_s0 + $0x18] sm:$0xff]  ;;  %v39_v9 = vld [vmem:[%s1524_s0 + $0x28] sm:$0xff] }
   0x3   :  { %99 = vmatpush.bf16.msra.mxu0 %v90_v2  ;;  %v52_v4 = vpack.c.bf16 %v35_v3, %v34_v1  ;;  %v53_v7 = vpack.c.bf16 %v37_v6, %v36_v5  ;;  %v38_v8 = vld [vmem:[%s1524_s0 + $0x20] sm:$0xff]  ;;  %v40_v11 = vld [vmem:[%s1524_s0 + $0x30] sm:$0xff]  ;;  %v41_v12 = vld [vmem:[%s1524_s0 + $0x38] sm:$0xff] }
   0x4   :  { %v54_v10 = vpack.c.bf16 %v39_v9, %v38_v8  ;;  %v55_v13 = vpack.c.bf16 %v41_v12, %v40_v11  ;;  %v42_v14 = vld [vmem:[%s1524_s0 + $0x40] sm:$0xff]  ;;  %v43_v15 = vld [vmem:[%s1524_s0 + $0x48] sm:$0xff]  ;;  %v953_v17 = vld [vmem:[%s1527_s3 + $0x38] sm:$0xff] }
   0x5   :  { %v56_v16 = vpack.c.bf16 %v43_v15, %v42_v14  ;;  %233 = vmatpush.bf16.msra.mxu1 %v953_v17  ;;  %962 = vmatpush.bf16.msra.mxu3 %v953_v17  ;;  %v44_v18 = vld [vmem:[%s1524_s0 + $0x50] sm:$0xff]  ;;  %v45_v19 = vld [vmem:[%s1524_s0 + $0x58] sm:$0xff]  ;;  %v951_v22 = vld [vmem:[%s1527_s3 + $0x28] sm:$0xff] }
   0x6   :  { %874 = vmatmul.msk.bf16.vlgmr.msra.gmra.mxu0 %vm63_vm1, %v52_v4  ;;  %v57_v20 = vpack.c.bf16 %v45_v19, %v44_v18  ;;  %v952_v21 = vld [vmem:[%s1527_s3 + $0x30] sm:$0xff]  ;;  %v950_v23 = vld [vmem:[%s1527_s3 + $0x20] sm:$0xff]  ;;  %v47_v25 = vld [vmem:[%s1524_s0 + $0x68] sm:$0xff] }
   0x7   :  { %v46_v24 = vld [vmem:[%s1524_s0 + $0x60] sm:$0xff]  ;;  %v949_v26 = vld [vmem:[%s1527_s3 + $0x18] sm:$0xff]  ;;  %v948_v28 = vld [vmem:[%s1527_s3 + $0x10] sm:$0xff] }
   0x8   :  { %v58_v27 = vpack.c.bf16 %v47_v25, %v46_v24  ;;  %v947_v29 = vld [vmem:[%s1527_s3 + $0x8] sm:$0xff]  ;;  %v946_v30 = vld [vmem:[%s1527_s3] sm:$0xff]  ;;  %v48_v31 = vld [vmem:[%s1524_s0 + $0x70] sm:$0xff] }
   0x9   :  { %234 = vmatpush.bf16.msra.mxu1 %v952_v21  ;;  %963 = vmatpush.bf16.msra.mxu3 %v952_v21  ;;  %v49_v32 = vld [vmem:[%s1524_s0 + $0x78] sm:$0xff]  ;;  %v1187_v35 = vld [vmem:[%s1526_s2] ss:$0 sm:$0xff]  ;;  %v960_v14 = vld [vmem:[%s1529_s5 + $0x30] sm:$0xff] }
   0xa   :  { %v59_v33 = vpack.c.bf16 %v49_v32, %v48_v31  ;;  %v958_v17 = vld [vmem:[%s1529_s5 + $0x20] sm:$0xff]  ;;  %v957_v21 = vld [vmem:[%s1529_s5 + $0x18] sm:$0xff]  ;;  %v956_v25 = vld [vmem:[%s1529_s5 + $0x10] sm:$0xff] }
   0xd   :  { %235 = vmatpush.bf16.msra.mxu1 %v951_v22  ;;  %964 = vmatpush.bf16.msra.mxu3 %v951_v22 }
  0x11   :  { %236 = vmatpush.bf16.msra.mxu1 %v950_v23  ;;  %965 = vmatpush.bf16.msra.mxu3 %v950_v23 }
  0x15   :  { %237 = vmatpush.bf16.msra.mxu1 %v949_v26  ;;  %966 = vmatpush.bf16.msra.mxu3 %v949_v26 }
  0x16   :  { %875 = vmatmul.msk.bf16.gmra.mxu0 %vm63_vm1, %v53_v7 }
  0x19   :  { %238 = vmatpush.bf16.msra.mxu1 %v948_v28  ;;  %967 = vmatpush.bf16.msra.mxu3 %v948_v28  ;;  %v954_v28 = vld [vmem:[%s1529_s5] sm:$0xff] }
  0x1d   :  { %239 = vmatpush.bf16.msra.mxu1 %v947_v29  ;;  %968 = vmatpush.bf16.msra.mxu3 %v947_v29 }
  0x21   :  { %240 = vmatpush.bf16.msra.mxu1 %v946_v30  ;;  %969 = vmatpush.bf16.msra.mxu3 %v946_v30 }
  0x26   :  { %876 = vmatmul.msk.bf16.gmra.mxu0 %vm63_vm1, %v54_v10  ;;  %v961_v10 = vld [vmem:[%s1529_s5 + $0x38] sm:$0xff] }
  0x27   :  { %374 = vmatpush.bf16.msra.mxu2 %v961_v10  ;;  %970 = vmatpush.bf16.msrb.mxu3 %v961_v10 }
  0x2b   :  { %375 = vmatpush.bf16.msra.mxu2 %v960_v14  ;;  %971 = vmatpush.bf16.msrb.mxu3 %v960_v14 }
  0x36   :  { %877 = vmatmul.msk.bf16.gmra.mxu0 %vm63_vm1, %v55_v13 }
  0x46   :  { %878 = vmatmul.msk.bf16.gmra.mxu0 %vm63_vm1, %v56_v16  ;;  %v959_v16 = vld [vmem:[%s1529_s5 + $0x28] sm:$0xff] }
  0x47   :  { %376 = vmatpush.bf16.msra.mxu2 %v959_v16  ;;  %972 = vmatpush.bf16.msrb.mxu3 %v959_v16 }
  0x4b   :  { %377 = vmatpush.bf16.msra.mxu2 %v958_v17  ;;  %973 = vmatpush.bf16.msrb.mxu3 %v958_v17 }
  0x4f   :  { %378 = vmatpush.bf16.msra.mxu2 %v957_v21  ;;  %974 = vmatpush.bf16.msrb.mxu3 %v957_v21 }
  0x53   :  { %379 = vmatpush.bf16.msra.mxu2 %v956_v25  ;;  %975 = vmatpush.bf16.msrb.mxu3 %v956_v25 }
  0x56   :  { %879 = vmatmul.msk.bf16.gmra.mxu0 %vm63_vm1, %v57_v20 }
  0x66   :  { %880 = vmatmul.msk.bf16.gmra.mxu0 %vm63_vm1, %v58_v27  ;;  %v955_v27 = vld [vmem:[%s1529_s5 + $0x8] sm:$0xff] }
  0x67   :  { %380 = vmatpush.bf16.msra.mxu2 %v955_v27  ;;  %976 = vmatpush.bf16.msrb.mxu3 %v955_v27 }
  0x6b   :  { %381 = vmatpush.bf16.msra.mxu2 %v954_v28  ;;  %977 = vmatpush.bf16.msrb.mxu3 %v954_v28  ;;  %v1235_v28 = vld [vmem:[%s1530_s6] ss:$0 sm:$0xff] }
  0x76   :  { %881 = vmatmul.msk.bf16.gmra.mxu0 %vm63_vm1, %v59_v33 }
  0x83   :  { %v101_v34 = vpop.f32.mrf.mxu0 }
  0x84   :  { %v102_v36 = vadd.f32 %v1187_v35, %v101_v34 }
  0x86   :  { %v141_v39 = vmax.f32 %v102_v36, 0.0 }
  0x8b   :  { %v103_v37 = vpop.f32.mrf.mxu0 }
  0x8c   :  { %v104_v38 = vadd.f32 %v1187_v35, %v103_v37  ;;  %v983_v37 = vld [vmem:[%s1528_s4] ss:$0 sm:$0xff] }
  0x8e   :  { %v142_v40 = vmax.f32 %v104_v38, 0.0 }
  0x90   :  { %v174_v41 = vpack.c.bf16 %v142_v40, %v141_v39 }
  0x92   :  { %241 = vmatmul.bf16.vlgmr.msra.gmra.mxu1 %v174_v41 }
  0x93   :  { %v106_v42 = vpop.f32.mrf.mxu0 }
  0x94   :  { %v107_v43 = vadd.f32 %v1187_v35, %v106_v42 }
  0x96   :  { %v143_v46 = vmax.f32 %v107_v43, 0.0 }
  0x9b   :  { %v108_v44 = vpop.f32.mrf.mxu0 }
  0x9c   :  { %v109_v45 = vadd.f32 %v1187_v35, %v108_v44 }
  0x9e   :  { %v144_v47 = vmax.f32 %v109_v45, 0.0 }
  0xa0   :  { %v175_v48 = vpack.c.bf16 %v144_v47, %v143_v46 }
  0xa2   :  { %246 = vmatmul.bf16.gmra.mxu1 %v175_v48 }
  0xa3   :  { %v111_v49 = vpop.f32.mrf.mxu0 }
  0xa4   :  { %v112_v50 = vadd.f32 %v1187_v35, %v111_v49 }
  0xa6   :  { %v145_v53 = vmax.f32 %v112_v50, 0.0 }
  0xab   :  { %v113_v51 = vpop.f32.mrf.mxu0 }
  0xac   :  { %v114_v52 = vadd.f32 %v1187_v35, %v113_v51 }
  0xae   :  { %v146_v54 = vmax.f32 %v114_v52, 0.0 }
  0xb0   :  { %v176_v55 = vpack.c.bf16 %v146_v54, %v145_v53 }
  0xb2   :  { %251 = vmatmul.bf16.gmra.mxu1 %v176_v55 }
  0xb3   :  { %v116_v56 = vpop.f32.mrf.mxu0 }
  0xb4   :  { %v117_v57 = vadd.f32 %v1187_v35, %v116_v56 }
  0xb6   :  { %v147_v60 = vmax.f32 %v117_v57, 0.0 }
  0xbb   :  { %v118_v58 = vpop.f32.mrf.mxu0 }
  0xbc   :  { %v119_v59 = vadd.f32 %v1187_v35, %v118_v58 }
  0xbe   :  { %v148_v61 = vmax.f32 %v119_v59, 0.0 }
  0xc0   :  { %v177_v62 = vpack.c.bf16 %v148_v61, %v147_v60 }
  0xc2   :  { %256 = vmatmul.bf16.gmra.mxu1 %v177_v62 }
  0xc3   :  { %v121_v63 = vpop.f32.mrf.mxu0 }
  0xc4   :  { %v122_v0 = vadd.f32 %v1187_v35, %v121_v63 }
  0xc6   :  { %v149_v3 = vmax.f32 %v122_v0, 0.0 }
  0xcb   :  { %v123_v1 = vpop.f32.mrf.mxu0 }
  0xcc   :  { %v124_v2 = vadd.f32 %v1187_v35, %v123_v1 }
  0xce   :  { %v150_v4 = vmax.f32 %v124_v2, 0.0 }
  0xd0   :  { %v178_v5 = vpack.c.bf16 %v150_v4, %v149_v3 }
  0xd2   :  { %261 = vmatmul.bf16.gmra.mxu1 %v178_v5 }
  0xd3   :  { %v126_v6 = vpop.f32.mrf.mxu0 }
  0xd4   :  { %v127_v7 = vadd.f32 %v1187_v35, %v126_v6 }
  0xd6   :  { %v151_v11 = vmax.f32 %v127_v7, 0.0 }
  0xdb   :  { %v128_v8 = vpop.f32.mrf.mxu0 }
  0xdc   :  { %v129_v9 = vadd.f32 %v1187_v35, %v128_v8 }
  0xde   :  { %v152_v12 = vmax.f32 %v129_v9, 0.0 }
  0xe0   :  { %v179_v13 = vpack.c.bf16 %v152_v12, %v151_v11 }
  0xe2   :  { %266 = vmatmul.bf16.gmra.mxu1 %v179_v13 }
  0xe3   :  { %v131_v15 = vpop.f32.mrf.mxu0 }
  0xe4   :  { %v132_v18 = vadd.f32 %v1187_v35, %v131_v15 }
  0xe6   :  { %v153_v22 = vmax.f32 %v132_v18, 0.0 }
  0xeb   :  { %v133_v19 = vpop.f32.mrf.mxu0 }
  0xec   :  { %v134_v20 = vadd.f32 %v1187_v35, %v133_v19 }
  0xee   :  { %v154_v23 = vmax.f32 %v134_v20, 0.0 }
  0xf0   :  { %v180_v24 = vpack.c.bf16 %v154_v23, %v153_v22 }
  0xf2   :  { %271 = vmatmul.bf16.vlgmr.msra.gmra.mxu3 %v180_v24 }
  0xf3   :  { %v136_v26 = vpop.f32.mrf.mxu0 }
  0xf4   :  { %v137_v29 = vadd.f32 %v1187_v35, %v136_v26 }
  0xf6   :  { %v155_v32 = vmax.f32 %v137_v29, 0.0 }
  0xfb   :  { %v138_v30 = vpop.f32.mrf.mxu0 }
  0xfc   :  { %v139_v31 = vadd.f32 %v1187_v35, %v138_v30 }
  0xfe   :  { %v156_v33 = vmax.f32 %v139_v31, 0.0 }
 0x100   :  { %v181_v34 = vpack.c.bf16 %v156_v33, %v155_v32 }
 0x102   :  { %276 = vmatmul.bf16.gmra.mxu3 %v181_v34 }
 0x10f   :  { %v242_v36 = vpop.f32.mrf.mxu1 }
 0x110   :  { %v243_v38 = vadd.f32 %v983_v37, %v242_v36 }
 0x112   :  { %v282_v41 = vmax.f32 %v243_v38, 0.0 }
 0x117   :  { %v244_v39 = vpop.f32.mrf.mxu1 }
 0x118   :  { %v245_v40 = vadd.f32 %v983_v37, %v244_v39 }
 0x11a   :  { %v283_v42 = vmax.f32 %v245_v40, 0.0 }
 0x11c   :  { %v315_v43 = vpack.c.bf16 %v283_v42, %v282_v41 }
 0x11e   :  { %382 = vmatmul.bf16.vlgmr.msra.gmra.mxu2 %v315_v43 }
 0x11f   :  { %v247_v44 = vpop.f32.mrf.mxu1 }
 0x120   :  { %v248_v45 = vadd.f32 %v983_v37, %v247_v44 }
 0x122   :  { %v284_v47 = vmax.f32 %v248_v45, 0.0 }
 0x127   :  { %v249_v46 = vpop.f32.mrf.mxu1 }
 0x128   :  { %v250_v35 = vadd.f32 %v983_v37, %v249_v46 }
 0x12a   :  { %v285_v48 = vmax.f32 %v250_v35, 0.0 }
 0x12c   :  { %v316_v49 = vpack.c.bf16 %v285_v48, %v284_v47 }
 0x12e   :  { %387 = vmatmul.bf16.gmra.mxu2 %v316_v49 }
 0x12f   :  { %v252_v50 = vpop.f32.mrf.mxu1 }
 0x130   :  { %v253_v51 = vadd.f32 %v983_v37, %v252_v50 }
 0x132   :  { %v286_v54 = vmax.f32 %v253_v51, 0.0 }
 0x137   :  { %v254_v52 = vpop.f32.mrf.mxu1 }
 0x138   :  { %v255_v53 = vadd.f32 %v983_v37, %v254_v52 }
 0x13a   :  { %v287_v55 = vmax.f32 %v255_v53, 0.0 }
 0x13c   :  { %v317_v56 = vpack.c.bf16 %v287_v55, %v286_v54 }
 0x13e   :  { %392 = vmatmul.bf16.gmra.mxu2 %v317_v56 }
 0x13f   :  { %v257_v57 = vpop.f32.mrf.mxu1 }
 0x140   :  { %v258_v58 = vadd.f32 %v983_v37, %v257_v57 }
 0x142   :  { %v288_v61 = vmax.f32 %v258_v58, 0.0 }
 0x147   :  { %v259_v59 = vpop.f32.mrf.mxu1 }
 0x148   :  { %v260_v60 = vadd.f32 %v983_v37, %v259_v59 }
 0x14a   :  { %v289_v62 = vmax.f32 %v260_v60, 0.0 }
 0x14c   :  { %v318_v63 = vpack.c.bf16 %v289_v62, %v288_v61 }
 0x14e   :  { %397 = vmatmul.bf16.gmra.mxu2 %v318_v63 }
 0x14f   :  { %v262_v0 = vpop.f32.mrf.mxu1 }
 0x150   :  { %v263_v1 = vadd.f32 %v983_v37, %v262_v0 }
 0x152   :  { %v290_v4 = vmax.f32 %v263_v1, 0.0  ;;  %v1047_v1 = vmov 32.0  }
 0x153   :  { %987 = vrcp.f32 %v1047_v1 }
 0x157   :  { %v264_v2 = vpop.f32.mrf.mxu1 }
 0x158   :  { %v265_v3 = vadd.f32 %v983_v37, %v264_v2 }
 0x159   :  { %v988_v2 = vpop.eup %987 }
 0x15a   :  { %v291_v5 = vmax.f32 %v265_v3, 0.0  ;;  %v475_v3 = vmul.f32 32.0, %v988_v2  ;;  %vm479_vm3 = vweird.f32 %v988_v2 }
 0x15c   :  { %v319_v6 = vpack.c.bf16 %v291_v5, %v290_v4 }
 0x15e   :  { %402 = vmatmul.bf16.gmra.mxu2 %v319_v6 }
 0x15f   :  { %v267_v7 = vpop.f32.mrf.mxu1 }
 0x160   :  { %v268_v8 = vadd.f32 %v983_v37, %v267_v7  ;;  %v476_v7 = vsub.f32 1.0, %v475_v3 }
 0x162   :  { %v292_v11 = vmax.f32 %v268_v8, 0.0  ;;  %v477_v8 = vmul.f32 %v988_v2, %v476_v7 }
 0x167   :  { %v269_v9 = vpop.f32.mrf.mxu1 }
 0x168   :  { %v270_v10 = vadd.f32 %v983_v37, %v269_v9 }
 0x16a   :  { %v293_v12 = vmax.f32 %v270_v10, 0.0 }
 0x16c   :  { %v320_v13 = vpack.c.bf16 %v293_v12, %v292_v11  ;;  %v478_v12 = vadd.f32 %v988_v2, %v477_v8 }
 0x16e   :  { %407 = vmatmul.bf16.gmra.mxu2 %v320_v13  ;;  %v1307_v13 = vsel %vm479_vm3, %v988_v2, %v478_v12 }
 0x175   :  { %v272_v14 = vpop.f32.mrf.mxu3 }
 0x176   :  { %v273_v15 = vadd.f32 %v983_v37, %v272_v14 }
 0x178   :  { %v294_v18 = vmax.f32 %v273_v15, 0.0 }
 0x17d   :  { %v274_v16 = vpop.f32.mrf.mxu3 }
 0x17e   :  { %v275_v17 = vadd.f32 %v983_v37, %v274_v16 }
 0x180   :  { %v295_v19 = vmax.f32 %v275_v17, 0.0 }
 0x182   :  { %v321_v20 = vpack.c.bf16 %v295_v19, %v294_v18 }
 0x184   :  { %412 = vmatmul.bf16.vlgmr.msrb.gmra.mxu3 %v321_v20 }
 0x185   :  { %v277_v21 = vpop.f32.mrf.mxu3 }
 0x186   :  { %v278_v22 = vadd.f32 %v983_v37, %v277_v21 }
 0x188   :  { %v296_v25 = vmax.f32 %v278_v22, 0.0 }
 0x18d   :  { %v279_v23 = vpop.f32.mrf.mxu3 }
 0x18e   :  { %v280_v24 = vadd.f32 %v983_v37, %v279_v23 }
 0x190   :  { %v297_v26 = vmax.f32 %v280_v24, 0.0 }
 0x192   :  { %v322_v27 = vpack.c.bf16 %v297_v26, %v296_v25 }
 0x194   :  { %417 = vmatmul.bf16.gmra.mxu3 %v322_v27 }
 0x1a1   :  { %v383_v29 = vpop.f32.mrf.mxu2 }
 0x1a2   :  { %v1238_v30 = vadd.f32 %v1235_v28, %v383_v29 }
 0x1a4   :  { %v426_v31 = vsel %vm425_vm2, %v1238_v30, 0.0 }
 0x1a5   :  { %427 = vadd.xlane.f32.xlu0 %v426_v31 }
 0x1a9   :  { %v385_v32 = vpop.f32.mrf.mxu2 }
 0x1aa   :  { %v1243_v33 = vadd.f32 %v1235_v28, %v385_v32 }
 0x1ac   :  { %v429_v34 = vsel %vm425_vm2, %v1243_v33, 0.0 }
 0x1ad   :  { %430 = vadd.xlane.f32.xlu0 %v429_v34 }
 0x1b1   :  { %v388_v36 = vpop.f32.mrf.mxu2 }
 0x1b2   :  { %v1248_v37 = vadd.f32 %v1235_v28, %v388_v36 }
 0x1b4   :  { %v432_v38 = vsel %vm425_vm2, %v1248_v37, 0.0 }
 0x1b5   :  { %433 = vadd.xlane.f32.xlu1 %v432_v38 }
 0x1b9   :  { %v390_v39 = vpop.f32.mrf.mxu2 }
 0x1ba   :  { %v1253_v40 = vadd.f32 %v1235_v28, %v390_v39 }
 0x1bc   :  { %v435_v41 = vsel %vm425_vm2, %v1253_v40, 0.0 }
 0x1bd   :  { %436 = vadd.xlane.f32.xlu1 %v435_v41 }
 0x1c1   :  { %v393_v42 = vpop.f32.mrf.mxu2 }
 0x1c2   :  { %v1258_v43 = vadd.f32 %v1235_v28, %v393_v42 }
 0x1c4   :  { %v438_v44 = vsel %vm425_vm2, %v1258_v43, 0.0 }
 0x1c5   :  { %439 = vadd.xlane.f32.xlu2 %v438_v44 }
 0x1c9   :  { %v395_v45 = vpop.f32.mrf.mxu2 }
 0x1ca   :  { %v1263_v46 = vadd.f32 %v1235_v28, %v395_v45 }
 0x1cc   :  { %v441_v35 = vsel %vm425_vm2, %v1263_v46, 0.0 }
 0x1cd   :  { %442 = vadd.xlane.f32.xlu2 %v441_v35 }
 0x1d1   :  { %v398_v47 = vpop.f32.mrf.mxu2 }
 0x1d2   :  { %v1268_v48 = vadd.f32 %v1235_v28, %v398_v47 }
 0x1d4   :  { %v444_v49 = vsel %vm425_vm2, %v1268_v48, 0.0 }
 0x1d5   :  { %445 = vadd.xlane.f32.xlu0 %v444_v49 }
 0x1d9   :  { %v400_v50 = vpop.f32.mrf.mxu2 }
 0x1da   :  { %v1273_v51 = vadd.f32 %v1235_v28, %v400_v50 }
 0x1dc   :  { %v447_v52 = vsel %vm425_vm2, %v1273_v51, 0.0 }
 0x1dd   :  { %448 = vadd.xlane.f32.xlu1 %v447_v52 }
 0x1e1   :  { %v403_v53 = vpop.f32.mrf.mxu2 }
 0x1e2   :  { %v1278_v54 = vadd.f32 %v1235_v28, %v403_v53 }
 0x1e4   :  { %v450_v55 = vsel %vm425_vm2, %v1278_v54, 0.0 }
 0x1e5   :  { %451 = vadd.xlane.f32.xlu2 %v450_v55 }
 0x1e9   :  { %v405_v56 = vpop.f32.mrf.mxu2 }
 0x1ea   :  { %v1283_v57 = vadd.f32 %v1235_v28, %v405_v56 }
 0x1ec   :  { %v453_v58 = vsel %vm425_vm2, %v1283_v57, 0.0 }
 0x1ed   :  { %454 = vadd.xlane.f32.xlu0 %v453_v58 }
 0x1f1   :  { %v408_v59 = vpop.f32.mrf.mxu2 }
 0x1f2   :  { %v1288_v60 = vadd.f32 %v1235_v28, %v408_v59 }
 0x1f4   :  { %v456_v61 = vsel %vm425_vm2, %v1288_v60, 0.0 }
 0x1f5   :  { %457 = vadd.xlane.f32.xlu1 %v456_v61 }
 0x1f9   :  { %v410_v62 = vpop.f32.mrf.mxu2 }
 0x1fa   :  { %v1293_v63 = vadd.f32 %v1235_v28, %v410_v62 }
 0x1fc   :  { %v459_v0 = vsel %vm425_vm2, %v1293_v63, 0.0 }
 0x1fd   :  { %460 = vadd.xlane.f32.xlu2 %v459_v0 }
 0x207   :  { %v413_v4 = vpop.f32.mrf.mxu3 }
 0x208   :  { %v1298_v5 = vadd.f32 %v1235_v28, %v413_v4 }
 0x20a   :  { %v462_v6 = vsel %vm425_vm2, %v1298_v5, 0.0 }
 0x20b   :  { %463 = vadd.xlane.f32.xlu0 %v462_v6 }
 0x20f   :  { %v415_v9 = vpop.f32.mrf.mxu3 }
 0x210   :  { %v1303_v10 = vadd.f32 %v1235_v28, %v415_v9 }
 0x212   :  { %v465_v11 = vsel %vm425_vm2, %v1303_v10, 0.0 }
 0x213   :  { %466 = vadd.xlane.f32.xlu1 %v465_v11 }
 0x217   :  { %v418_v14 = vpop.f32.mrf.mxu3 }
 0x218   :  { %v1310_v15 = vadd.f32 %v1235_v28, %v418_v14  ;;  %v428_v16 = vpop.xlane.xlu0 %427 }
 0x219   :  { %v481_v17 = vmul.f32 %v1307_v13, %v428_v16 }
 0x21a   :  { %v468_v18 = vsel %vm425_vm2, %v1310_v15, 0.0 }
 0x21b   :  { %v1316_v19 = vsub.f32 %v1238_v30, %v481_v17  ;;  %469 = vadd.xlane.f32.xlu2 %v468_v18 }
 0x21d   :  { %v513_v20 = vmul.f32 %v1316_v19, %v1316_v19 }
 0x21f   :  { %v420_v21 = vpop.f32.mrf.mxu3  ;;  %v529_v22 = vsel %vm425_vm2, %v513_v20, 0.0 }
 0x220   :  { %v1322_v23 = vadd.f32 %v1235_v28, %v420_v21  ;;  %530 = vadd.xlane.f32.xlu1 %v529_v22  ;;  %v431_v24 = vpop.xlane.xlu0 %430 }
 0x221   :  { %v482_v25 = vmul.f32 %v1307_v13, %v431_v24 }
 0x222   :  { %v471_v26 = vsel %vm425_vm2, %v1322_v23, 0.0 }
 0x223   :  { %v1328_v27 = vsub.f32 %v1243_v33, %v482_v25  ;;  %472 = vadd.xlane.f32.xlu0 %v471_v26 }
 0x225   :  { %v514_v29 = vmul.f32 %v1328_v27, %v1328_v27 }
 0x227   :  { %v532_v30 = vsel %vm425_vm2, %v514_v29, 0.0 }
 0x228   :  { %v434_v31 = vpop.xlane.xlu1 %433  ;;  %533 = vadd.xlane.f32.xlu2 %v532_v30 }
 0x229   :  { %v483_v28 = vmul.f32 %v1307_v13, %v434_v31 }
 0x22b   :  { %v1335_v32 = vsub.f32 %v1248_v37, %v483_v28 }
 0x22d   :  { %v515_v34 = vmul.f32 %v1335_v32, %v1335_v32 }
 0x22f   :  { %v535_v36 = vsel %vm425_vm2, %v515_v34, 0.0 }
 0x230   :  { %v437_v33 = vpop.xlane.xlu1 %436  ;;  %536 = vadd.xlane.f32.xlu0 %v535_v36 }
 0x231   :  { %v484_v38 = vmul.f32 %v1307_v13, %v437_v33 }
 0x233   :  { %v1342_v39 = vsub.f32 %v1253_v40, %v484_v38 }
 0x235   :  { %v516_v41 = vmul.f32 %v1342_v39, %v1342_v39 }
 0x237   :  { %v538_v42 = vsel %vm425_vm2, %v516_v41, 0.0 }
 0x238   :  { %v440_v44 = vpop.xlane.xlu2 %439  ;;  %539 = vadd.xlane.f32.xlu1 %v538_v42 }
 0x239   :  { %v485_v37 = vmul.f32 %v1307_v13, %v440_v44 }
 0x23b   :  { %v1349_v45 = vsub.f32 %v1258_v43, %v485_v37 }
 0x23d   :  { %v517_v35 = vmul.f32 %v1349_v45, %v1349_v45 }
 0x23f   :  { %v541_v47 = vsel %vm425_vm2, %v517_v35, 0.0 }
 0x240   :  { %v443_v49 = vpop.xlane.xlu2 %442  ;;  %542 = vadd.xlane.f32.xlu2 %v541_v47 }
 0x241   :  { %v486_v40 = vmul.f32 %v1307_v13, %v443_v49 }
 0x243   :  { %v1356_v50 = vsub.f32 %v1263_v46, %v486_v40 }
 0x245   :  { %v518_v52 = vmul.f32 %v1356_v50, %v1356_v50 }
 0x247   :  { %v544_v53 = vsel %vm425_vm2, %v518_v52, 0.0 }
 0x248   :  { %545 = vadd.xlane.f32.xlu0 %v544_v53  ;;  %v446_v43 = vpop.xlane.xlu0 %445 }
 0x249   :  { %v487_v55 = vmul.f32 %v1307_v13, %v446_v43 }
 0x24b   :  { %v1363_v56 = vsub.f32 %v1268_v48, %v487_v55 }
 0x24d   :  { %v519_v58 = vmul.f32 %v1363_v56, %v1363_v56 }
 0x24f   :  { %v547_v59 = vsel %vm425_vm2, %v519_v58, 0.0 }
 0x250   :  { %v449_v61 = vpop.xlane.xlu1 %448  ;;  %548 = vadd.xlane.f32.xlu1 %v547_v59 }
 0x251   :  { %v488_v46 = vmul.f32 %v1307_v13, %v449_v61 }
 0x253   :  { %v1370_v62 = vsub.f32 %v1273_v51, %v488_v46 }
 0x255   :  { %v520_v0 = vmul.f32 %v1370_v62, %v1370_v62 }
 0x257   :  { %v550_v1 = vsel %vm425_vm2, %v520_v0, 0.0 }
 0x258   :  { %v452_v2 = vpop.xlane.xlu2 %451  ;;  %551 = vadd.xlane.f32.xlu2 %v550_v1 }
 0x259   :  { %v489_v48 = vmul.f32 %v1307_v13, %v452_v2 }
 0x25b   :  { %v1377_v3 = vsub.f32 %v1278_v54, %v489_v48 }
 0x25d   :  { %v521_v4 = vmul.f32 %v1377_v3, %v1377_v3 }
 0x25f   :  { %v553_v6 = vsel %vm425_vm2, %v521_v4, 0.0  ;;  %v1437_v4 = vld [vmem:[%s1531_s7] ss:$0 sm:$0xff] }
 0x260   :  { %554 = vadd.xlane.f32.xlu0 %v553_v6  ;;  %v455_v51 = vpop.xlane.xlu0 %454 }
 0x261   :  { %v490_v7 = vmul.f32 %v1307_v13, %v455_v51 }
 0x263   :  { %v1384_v8 = vsub.f32 %v1283_v57, %v490_v7  ;;  %v1442_v7 = vld [vmem:[%s1532_s8] ss:$0 sm:$0xff] }
 0x265   :  { %v522_v9 = vmul.f32 %v1384_v8, %v1384_v8 }
 0x267   :  { %v556_v11 = vsel %vm425_vm2, %v522_v9, 0.0 }
 0x268   :  { %v458_v12 = vpop.xlane.xlu1 %457  ;;  %557 = vadd.xlane.f32.xlu1 %v556_v11 }
 0x269   :  { %v491_v54 = vmul.f32 %v1307_v13, %v458_v12 }
 0x26b   :  { %v1391_v14 = vsub.f32 %v1288_v60, %v491_v54 }
 0x26d   :  { %v523_v16 = vmul.f32 %v1391_v14, %v1391_v14 }
 0x26f   :  { %v559_v17 = vsel %vm425_vm2, %v523_v16, 0.0 }
 0x270   :  { %v461_v18 = vpop.xlane.xlu2 %460  ;;  %560 = vadd.xlane.f32.xlu2 %v559_v17 }
 0x271   :  { %v492_v57 = vmul.f32 %v1307_v13, %v461_v18 }
 0x273   :  { %v1398_v20 = vsub.f32 %v1293_v63, %v492_v57 }
 0x275   :  { %v524_v21 = vmul.f32 %v1398_v20, %v1398_v20 }
 0x277   :  { %v562_v22 = vsel %vm425_vm2, %v524_v21, 0.0 }
 0x278   :  { %563 = vadd.xlane.f32.xlu0 %v562_v22 }
 0x27e   :  { %v464_v60 = vpop.xlane.xlu0 %463 }
 0x27f   :  { %v493_v24 = vmul.f32 %v1307_v13, %v464_v60 }
 0x281   :  { %v1405_v25 = vsub.f32 %v1298_v5, %v493_v24 }
 0x283   :  { %v525_v26 = vmul.f32 %v1405_v25, %v1405_v25 }
 0x285   :  { %v565_v29 = vsel %vm425_vm2, %v525_v26, 0.0 }
 0x286   :  { %v467_v30 = vpop.xlane.xlu1 %466  ;;  %566 = vadd.xlane.f32.xlu1 %v565_v29 }
 0x287   :  { %v494_v63 = vmul.f32 %v1307_v13, %v467_v30 }
 0x289   :  { %v1412_v31 = vsub.f32 %v1303_v10, %v494_v63 }
 0x28b   :  { %v526_v28 = vmul.f32 %v1412_v31, %v1412_v31 }
 0x28d   :  { %v568_v34 = vsel %vm425_vm2, %v526_v28, 0.0 }
 0x28e   :  { %v470_v36 = vpop.xlane.xlu2 %469  ;;  %569 = vadd.xlane.f32.xlu2 %v568_v34 }
 0x28f   :  { %v495_v5 = vmul.f32 %v1307_v13, %v470_v36 }
 0x291   :  { %v1419_v33 = vsub.f32 %v1310_v15, %v495_v5 }
 0x293   :  { %v531_v38 = vpop.xlane.xlu1 %530  ;;  %v527_v41 = vmul.f32 %v1419_v33, %v1419_v33 }
 0x294   :  { %v577_v42 = vmul.f32 %v531_v38, %v1307_v13 }
 0x295   :  { %v571_v10 = vsel %vm425_vm2, %v527_v41, 0.0 }
 0x296   :  { %v593_v44 = vadd.f32 1e-05, %v577_v42  ;;  %572 = vadd.xlane.f32.xlu0 %v571_v10  ;;  %v473_v37 = vpop.xlane.xlu0 %472 }
 0x297   :  { %v496_v35 = vmul.f32 %v1307_v13, %v473_v37 }
 0x298   :  { %989 = vrsqrt.f32 %v593_v44  ;;  %vm615_vm5 = vweird.f32 %v593_v44 }
 0x299   :  { %v1427_v47 = vsub.f32 %v1322_v23, %v496_v35 }
 0x29b   :  { %v534_v49 = vpop.xlane.xlu2 %533  ;;  %v528_v15 = vmul.f32 %v1427_v47, %v1427_v47 }
 0x29c   :  { %v578_v40 = vmul.f32 %v534_v49, %v1307_v13 }
 0x29d   :  { %v574_v52 = vsel %vm425_vm2, %v528_v15, 0.0 }
 0x29e   :  { %v990_v53 = vpop.eup %989  ;;  %v594_v43 = vadd.f32 1e-05, %v578_v40  ;;  %575 = vadd.xlane.f32.xlu1 %v574_v52 }
 0x29f   :  { %v610_v55 = vmul.f32 %v990_v53, %v593_v44  ;;  %vm616_vm4 = vweird.f32 %v990_v53 }
 0x2a0   :  { %991 = vrsqrt.f32 %v594_v43  ;;  %vm617_vm6 = vmor %vm615_vm5, %vm616_vm4  ;;  %vm625_vm9 = vweird.f32 %v594_v43 }
 0x2a1   :  { %v611_v58 = vmul.f32 %v990_v53, %v610_v55 }
 0x2a3   :  { %v612_v59 = vmul.f32 0.5, %v611_v58  ;;  %v537_v61 = vpop.xlane.xlu0 %536 }
 0x2a4   :  { %v579_v46 = vmul.f32 %v537_v61, %v1307_v13 }
 0x2a5   :  { %v613_v23 = vsub.f32 1.5, %v612_v59 }
 0x2a6   :  { %v992_v0 = vpop.eup %991  ;;  %v595_v1 = vadd.f32 1e-05, %v579_v46 }
 0x2a7   :  { %v614_v2 = vmul.f32 %v990_v53, %v613_v23  ;;  %v620_v48 = vmul.f32 %v992_v0, %v594_v43  ;;  %vm626_vm7 = vweird.f32 %v992_v0 }
 0x2a8   :  { %993 = vrsqrt.f32 %v595_v1  ;;  %vm627_vm10 = vmor %vm625_vm9, %vm626_vm7  ;;  %vm635_vm12 = vweird.f32 %v595_v1 }
 0x2a9   :  { %v618_v6 = vsel %vm617_vm6, %v990_v53, %v614_v2  ;;  %v621_v51 = vmul.f32 %v992_v0, %v620_v48 }
 0x2aa   :  { %v769_v9 = vmul.f32 %v618_v6, %v1316_v19 }
 0x2ab   :  { %v622_v11 = vmul.f32 0.5, %v621_v51  ;;  %v540_v12 = vpop.xlane.xlu1 %539 }
 0x2ac   :  { %v788_v54 = vmul.f32 %v1437_v4, %v769_v9  ;;  %v580_v16 = vmul.f32 %v540_v12, %v1307_v13 }
 0x2ad   :  { %v623_v17 = vsub.f32 1.5, %v622_v11 }
 0x2ae   :  { %v994_v18 = vpop.eup %993  ;;  %v807_v57 = vadd.f32 %v1442_v7, %v788_v54  ;;  %v596_v21 = vadd.f32 1e-05, %v580_v16 }
 0x2af   :  { %v624_v22 = vmul.f32 %v992_v0, %v623_v17  ;;  %v630_v60 = vmul.f32 %v994_v18, %v595_v1  ;;  %vm636_vm11 = vweird.f32 %v994_v18 }
 0x2b0   :  { %v823_v24 = vpack.c.bf16 %v807_v57, %v807_v57  ;;  %995 = vrsqrt.f32 %v596_v21  ;;  %vm637_vm13 = vmor %vm635_vm12, %vm636_vm11  ;;  %vm645_vm15 = vweird.f32 %v596_v21 }
 0x2b1   :  { %v628_v19 = vsel %vm627_vm10, %v992_v0, %v624_v22  ;;  %v631_v26 = vmul.f32 %v994_v18, %v630_v60 }
 0x2b2   :  { %840 = vst.msk [vmem:[#allocation2] sm:$0xf] %vm839_vm8, %v823_v24  ;;  %v770_v29 = vmul.f32 %v628_v19, %v1328_v27 }
 0x2b3   :  { %v632_v30 = vmul.f32 0.5, %v631_v26  ;;  %v543_v63 = vpop.xlane.xlu2 %542 }
 0x2b4   :  { %v789_v28 = vmul.f32 %v1437_v4, %v770_v29  ;;  %v581_v34 = vmul.f32 %v543_v63, %v1307_v13 }
 0x2b5   :  { %v633_v36 = vsub.f32 1.5, %v632_v30 }
 0x2b6   :  { %v996_v5 = vpop.eup %995  ;;  %v808_v38 = vadd.f32 %v1442_v7, %v789_v28  ;;  %v597_v41 = vadd.f32 1e-05, %v581_v34 }
 0x2b7   :  { %v634_v42 = vmul.f32 %v994_v18, %v633_v36  ;;  %v640_v10 = vmul.f32 %v996_v5, %v596_v21  ;;  %vm646_vm14 = vweird.f32 %v996_v5 }
 0x2b8   :  { %v824_v44 = vpack.c.bf16 %v808_v38, %v808_v38  ;;  %997 = vrsqrt.f32 %v597_v41  ;;  %vm647_vm0 = vmor %vm645_vm15, %vm646_vm14  ;;  %vm655_vm2 = vweird.f32 %v597_v41 }
 0x2b9   :  { %v638_v37 = vsel %vm637_vm13, %v994_v18, %v634_v42  ;;  %v641_v27 = vmul.f32 %v996_v5, %v640_v10 }
 0x2ba   :  { %841 = vst.msk [vmem:[#allocation2 + $0x4] sm:$0xf] %vm839_vm8, %v824_v44  ;;  %v771_v35 = vmul.f32 %v638_v37, %v1335_v32 }
 0x2bb   :  { %v642_v49 = vmul.f32 0.5, %v641_v27  ;;  %v546_v15 = vpop.xlane.xlu0 %545 }
 0x2bc   :  { %v790_v40 = vmul.f32 %v1437_v4, %v771_v35  ;;  %v582_v52 = vmul.f32 %v546_v15, %v1307_v13 }
 0x2bd   :  { %v643_v53 = vsub.f32 1.5, %v642_v49 }
 0x2be   :  { %v998_v43 = vpop.eup %997  ;;  %v809_v55 = vadd.f32 %v1442_v7, %v790_v40  ;;  %v598_v58 = vadd.f32 1e-05, %v582_v52 }
 0x2bf   :  { %v644_v59 = vmul.f32 %v996_v5, %v643_v53  ;;  %v650_v61 = vmul.f32 %v998_v43, %v597_v41  ;;  %vm656_vm1 = vweird.f32 %v998_v43 }
 0x2c0   :  { %v825_v46 = vpack.c.bf16 %v809_v55, %v809_v55  ;;  %999 = vrsqrt.f32 %v598_v58  ;;  %vm657_vm3 = vmor %vm655_vm2, %vm656_vm1  ;;  %vm665_vm5 = vweird.f32 %v598_v58 }
 0x2c1   :  { %v648_v23 = vsel %vm647_vm0, %v996_v5, %v644_v59  ;;  %v651_v32 = vmul.f32 %v998_v43, %v650_v61 }
 0x2c2   :  { %842 = vst.msk [vmem:[#allocation2 + $0x8] sm:$0xf] %vm839_vm8, %v825_v46  ;;  %v772_v0 = vmul.f32 %v648_v23, %v1342_v39 }
 0x2c3   :  { %v652_v1 = vmul.f32 0.5, %v651_v32  ;;  %v549_v2 = vpop.xlane.xlu1 %548 }
 0x2c4   :  { %v791_v48 = vmul.f32 %v1437_v4, %v772_v0  ;;  %v583_v6 = vmul.f32 %v549_v2, %v1307_v13 }
 0x2c5   :  { %v653_v51 = vsub.f32 1.5, %v652_v1 }
 0x2c6   :  { %v1000_v9 = vpop.eup %999  ;;  %v810_v11 = vadd.f32 %v1442_v7, %v791_v48  ;;  %v599_v12 = vadd.f32 1e-05, %v583_v6 }
 0x2c7   :  { %v654_v54 = vmul.f32 %v998_v43, %v653_v51  ;;  %v660_v16 = vmul.f32 %v1000_v9, %v598_v58  ;;  %vm666_vm4 = vweird.f32 %v1000_v9 }
 0x2c8   :  { %v826_v17 = vpack.c.bf16 %v810_v11, %v810_v11  ;;  %1001 = vrsqrt.f32 %v599_v12  ;;  %vm667_vm6 = vmor %vm665_vm5, %vm666_vm4  ;;  %vm675_vm9 = vweird.f32 %v599_v12 }
 0x2c9   :  { %v658_v18 = vsel %vm657_vm3, %v998_v43, %v654_v54  ;;  %v661_v39 = vmul.f32 %v1000_v9, %v660_v16 }
 0x2ca   :  { %843 = vst.msk [vmem:[#allocation2 + $0xc] sm:$0xf] %vm839_vm8, %v826_v17  ;;  %v773_v57 = vmul.f32 %v658_v18, %v1349_v45 }
 0x2cb   :  { %v662_v21 = vmul.f32 0.5, %v661_v39  ;;  %v552_v22 = vpop.xlane.xlu2 %551 }
 0x2cc   :  { %v792_v60 = vmul.f32 %v1437_v4, %v773_v57  ;;  %v584_v24 = vmul.f32 %v552_v22, %v1307_v13 }
 0x2cd   :  { %v663_v19 = vsub.f32 1.5, %v662_v21 }
 0x2ce   :  { %v1002_v26 = vpop.eup %1001  ;;  %v811_v29 = vadd.f32 %v1442_v7, %v792_v60  ;;  %v600_v30 = vadd.f32 1e-05, %v584_v24 }
 0x2cf   :  { %v664_v63 = vmul.f32 %v1000_v9, %v663_v19  ;;  %v670_v28 = vmul.f32 %v1002_v26, %v599_v12  ;;  %vm676_vm7 = vweird.f32 %v1002_v26 }
 0x2d0   :  { %v827_v34 = vpack.c.bf16 %v811_v29, %v811_v29  ;;  %1003 = vrsqrt.f32 %v600_v30  ;;  %vm677_vm10 = vmor %vm675_vm9, %vm676_vm7  ;;  %vm685_vm12 = vweird.f32 %v600_v30 }
 0x2d1   :  { %v668_v36 = vsel %vm667_vm6, %v1000_v9, %v664_v63  ;;  %v671_v45 = vmul.f32 %v1002_v26, %v670_v28 }
 0x2d2   :  { %844 = vst.msk [vmem:[#allocation2 + $0x10] sm:$0xf] %vm839_vm8, %v827_v34  ;;  %v774_v5 = vmul.f32 %v668_v36, %v1356_v50 }
 0x2d3   :  { %v672_v38 = vmul.f32 0.5, %v671_v45  ;;  %v555_v41 = vpop.xlane.xlu0 %554 }
 0x2d4   :  { %v793_v42 = vmul.f32 %v1437_v4, %v774_v5  ;;  %v585_v10 = vmul.f32 %v555_v41, %v1307_v13 }
 0x2d5   :  { %v673_v44 = vsub.f32 1.5, %v672_v38 }
 0x2d6   :  { %v1004_v37 = vpop.eup %1003  ;;  %v812_v27 = vadd.f32 %v1442_v7, %v793_v42  ;;  %v601_v35 = vadd.f32 1e-05, %v585_v10 }
 0x2d7   :  { %v674_v49 = vmul.f32 %v1002_v26, %v673_v44  ;;  %v680_v15 = vmul.f32 %v1004_v37, %v600_v30  ;;  %vm686_vm11 = vweird.f32 %v1004_v37 }
 0x2d8   :  { %v828_v40 = vpack.c.bf16 %v812_v27, %v812_v27  ;;  %1005 = vrsqrt.f32 %v601_v35  ;;  %vm687_vm13 = vmor %vm685_vm12, %vm686_vm11  ;;  %vm695_vm15 = vweird.f32 %v601_v35 }
 0x2d9   :  { %v678_v52 = vsel %vm677_vm10, %v1002_v26, %v674_v49  ;;  %v681_v50 = vmul.f32 %v1004_v37, %v680_v15 }
 0x2da   :  { %845 = vst.msk [vmem:[#allocation2 + $0x14] sm:$0xf] %vm839_vm8, %v828_v40  ;;  %v775_v53 = vmul.f32 %v678_v52, %v1363_v56 }
 0x2db   :  { %v682_v43 = vmul.f32 0.5, %v681_v50  ;;  %v558_v55 = vpop.xlane.xlu1 %557 }
 0x2dc   :  { %v794_v58 = vmul.f32 %v1437_v4, %v775_v53  ;;  %v586_v59 = vmul.f32 %v558_v55, %v1307_v13 }
 0x2dd   :  { %v683_v61 = vsub.f32 1.5, %v682_v43 }
 0x2de   :  { %v1006_v46 = vpop.eup %1005  ;;  %v813_v23 = vadd.f32 %v1442_v7, %v794_v58  ;;  %v602_v32 = vadd.f32 1e-05, %v586_v59 }
 0x2df   :  { %v684_v0 = vmul.f32 %v1004_v37, %v683_v61  ;;  %v690_v1 = vmul.f32 %v1006_v46, %v601_v35  ;;  %vm696_vm14 = vweird.f32 %v1006_v46 }
 0x2e0   :  { %v829_v2 = vpack.c.bf16 %v813_v23, %v813_v23  ;;  %1007 = vrsqrt.f32 %v602_v32  ;;  %vm697_vm0 = vmor %vm695_vm15, %vm696_vm14  ;;  %vm705_vm2 = vweird.f32 %v602_v32 }
 0x2e1   :  { %v688_v48 = vsel %vm687_vm13, %v1004_v37, %v684_v0  ;;  %v691_v56 = vmul.f32 %v1006_v46, %v690_v1 }
 0x2e2   :  { %846 = vst.msk [vmem:[#allocation2 + $0x18] sm:$0xf] %vm839_vm8, %v829_v2  ;;  %v776_v6 = vmul.f32 %v688_v48, %v1370_v62 }
 0x2e3   :  { %v692_v51 = vmul.f32 0.5, %v691_v56  ;;  %v561_v9 = vpop.xlane.xlu2 %560 }
 0x2e4   :  { %v795_v11 = vmul.f32 %v1437_v4, %v776_v6  ;;  %v587_v12 = vmul.f32 %v561_v9, %v1307_v13 }
 0x2e5   :  { %v693_v54 = vsub.f32 1.5, %v692_v51 }
 0x2e6   :  { %v1008_v16 = vpop.eup %1007  ;;  %v814_v17 = vadd.f32 %v1442_v7, %v795_v11  ;;  %v603_v18 = vadd.f32 1e-05, %v587_v12 }
 0x2e7   :  { %v694_v39 = vmul.f32 %v1006_v46, %v693_v54  ;;  %v700_v57 = vmul.f32 %v1008_v16, %v602_v32  ;;  %vm706_vm1 = vweird.f32 %v1008_v16 }
 0x2e8   :  { %v830_v21 = vpack.c.bf16 %v814_v17, %v814_v17  ;;  %1009 = vrsqrt.f32 %v603_v18  ;;  %vm707_vm3 = vmor %vm705_vm2, %vm706_vm1  ;;  %vm715_vm5 = vweird.f32 %v603_v18 }
 0x2e9   :  { %v698_v22 = vsel %vm697_vm0, %v1006_v46, %v694_v39  ;;  %v701_v62 = vmul.f32 %v1008_v16, %v700_v57 }
 0x2ea   :  { %847 = vst.msk [vmem:[#allocation2 + $0x1c] sm:$0xf] %vm839_vm8, %v830_v21  ;;  %v777_v60 = vmul.f32 %v698_v22, %v1377_v3 }
 0x2eb   :  { %v702_v24 = vmul.f32 0.5, %v701_v62  ;;  %v564_v19 = vpop.xlane.xlu0 %563 }
 0x2ec   :  { %v796_v26 = vmul.f32 %v1437_v4, %v777_v60  ;;  %v588_v29 = vmul.f32 %v564_v19, %v1307_v13 }
 0x2ed   :  { %v703_v30 = vsub.f32 1.5, %v702_v24 }
 0x2ee   :  { %v1010_v63 = vpop.eup %1009  ;;  %v815_v28 = vadd.f32 %v1442_v7, %v796_v26  ;;  %v604_v34 = vadd.f32 1e-05, %v588_v29 }
 0x2ef   :  { %v704_v36 = vmul.f32 %v1008_v16, %v703_v30  ;;  %v710_v45 = vmul.f32 %v1010_v63, %v603_v18  ;;  %vm716_vm4 = vweird.f32 %v1010_v63 }
 0x2f0   :  { %v831_v5 = vpack.c.bf16 %v815_v28, %v815_v28  ;;  %1011 = vrsqrt.f32 %v604_v34  ;;  %vm717_vm6 = vmor %vm715_vm5, %vm716_vm4  ;;  %vm725_vm9 = vweird.f32 %v604_v34 }
 0x2f1   :  { %v708_v38 = vsel %vm707_vm3, %v1008_v16, %v704_v36  ;;  %v711_v3 = vmul.f32 %v1010_v63, %v710_v45 }
 0x2f2   :  { %848 = vst.msk [vmem:[#allocation2 + $0x20] sm:$0xf] %vm839_vm8, %v831_v5  ;;  %v778_v41 = vmul.f32 %v708_v38, %v1384_v8 }
 0x2f3   :  { %v712_v42 = vmul.f32 0.5, %v711_v3 }
 0x2f4   :  { %v797_v10 = vmul.f32 %v1437_v4, %v778_v41 }
 0x2f5   :  { %v713_v44 = vsub.f32 1.5, %v712_v42 }
 0x2f6   :  { %v1012_v37 = vpop.eup %1011  ;;  %v816_v27 = vadd.f32 %v1442_v7, %v797_v10 }
 0x2f7   :  { %v714_v35 = vmul.f32 %v1010_v63, %v713_v44  ;;  %v720_v49 = vmul.f32 %v1012_v37, %v604_v34  ;;  %vm726_vm7 = vweird.f32 %v1012_v37 }
 0x2f8   :  { %v832_v15 = vpack.c.bf16 %v816_v27, %v816_v27  ;;  %vm727_vm10 = vmor %vm725_vm9, %vm726_vm7 }
 0x2f9   :  { %v718_v40 = vsel %vm717_vm6, %v1010_v63, %v714_v35  ;;  %v721_v52 = vmul.f32 %v1012_v37, %v720_v49  ;;  %v567_v50 = vpop.xlane.xlu1 %566 }
 0x2fa   :  { %849 = vst.msk [vmem:[#allocation2 + $0x24] sm:$0xf] %vm839_vm8, %v832_v15  ;;  %v779_v8 = vmul.f32 %v718_v40, %v1391_v14  ;;  %v589_v53 = vmul.f32 %v567_v50, %v1307_v13 }
 0x2fb   :  { %v722_v43 = vmul.f32 0.5, %v721_v52 }
 0x2fc   :  { %v798_v55 = vmul.f32 %v1437_v4, %v779_v8  ;;  %v605_v58 = vadd.f32 1e-05, %v589_v53 }
 0x2fd   :  { %v723_v59 = vsub.f32 1.5, %v722_v43 }
 0x2fe   :  { %v817_v61 = vadd.f32 %v1442_v7, %v798_v55  ;;  %1013 = vrsqrt.f32 %v605_v58  ;;  %vm735_vm12 = vweird.f32 %v605_v58 }
 0x2ff   :  { %v724_v46 = vmul.f32 %v1012_v37, %v723_v59 }
 0x300   :  { %v833_v23 = vpack.c.bf16 %v817_v61, %v817_v61 }
 0x301   :  { %v728_v32 = vsel %vm727_vm10, %v1012_v37, %v724_v46  ;;  %v570_v0 = vpop.xlane.xlu2 %569 }
 0x302   :  { %850 = vst.msk [vmem:[#allocation2 + $0x28] sm:$0xf] %vm839_vm8, %v833_v23  ;;  %v780_v14 = vmul.f32 %v728_v32, %v1398_v20  ;;  %v590_v1 = vmul.f32 %v570_v0, %v1307_v13 }
 0x304   :  { %v1014_v2 = vpop.eup %1013  ;;  %v799_v48 = vmul.f32 %v1437_v4, %v780_v14  ;;  %v606_v56 = vadd.f32 1e-05, %v590_v1 }
 0x305   :  { %v730_v6 = vmul.f32 %v1014_v2, %v605_v58  ;;  %vm736_vm11 = vweird.f32 %v1014_v2 }
 0x306   :  { %v818_v51 = vadd.f32 %v1442_v7, %v799_v48  ;;  %1015 = vrsqrt.f32 %v606_v56  ;;  %vm737_vm13 = vmor %vm735_vm12, %vm736_vm11  ;;  %vm745_vm15 = vweird.f32 %v606_v56 }
 0x307   :  { %v731_v9 = vmul.f32 %v1014_v2, %v730_v6 }
 0x308   :  { %v834_v11 = vpack.c.bf16 %v818_v51, %v818_v51 }
 0x309   :  { %v732_v12 = vmul.f32 0.5, %v731_v9  ;;  %v573_v54 = vpop.xlane.xlu0 %572 }
 0x30a   :  { %851 = vst.msk [vmem:[#allocation2 + $0x2c] sm:$0xf] %vm839_vm8, %v834_v11  ;;  %v591_v16 = vmul.f32 %v573_v54, %v1307_v13 }
 0x30b   :  { %v733_v17 = vsub.f32 1.5, %v732_v12 }
 0x30c   :  { %v1016_v20 = vpop.eup %1015  ;;  %v607_v18 = vadd.f32 1e-05, %v591_v16 }
 0x30d   :  { %v734_v39 = vmul.f32 %v1014_v2, %v733_v17  ;;  %v740_v57 = vmul.f32 %v1016_v20, %v606_v56  ;;  %vm746_vm14 = vweird.f32 %v1016_v20 }
 0x30e   :  { %1017 = vrsqrt.f32 %v607_v18  ;;  %vm747_vm0 = vmor %vm745_vm15, %vm746_vm14  ;;  %vm755_vm2 = vweird.f32 %v607_v18 }
 0x30f   :  { %v738_v21 = vsel %vm737_vm13, %v1014_v2, %v734_v39  ;;  %v741_v22 = vmul.f32 %v1016_v20, %v740_v57 }
 0x310   :  { %v781_v62 = vmul.f32 %v738_v21, %v1405_v25 }
 0x311   :  { %v742_v60 = vmul.f32 0.5, %v741_v22  ;;  %v576_v24 = vpop.xlane.xlu1 %575 }
 0x312   :  { %v800_v19 = vmul.f32 %v1437_v4, %v781_v62  ;;  %v592_v26 = vmul.f32 %v576_v24, %v1307_v13 }
 0x313   :  { %v743_v29 = vsub.f32 1.5, %v742_v60 }
 0x314   :  { %v1018_v30 = vpop.eup %1017  ;;  %v819_v63 = vadd.f32 %v1442_v7, %v800_v19  ;;  %v608_v28 = vadd.f32 1e-05, %v592_v26 }
 0x315   :  { %v744_v34 = vmul.f32 %v1016_v20, %v743_v29  ;;  %v750_v36 = vmul.f32 %v1018_v30, %v607_v18  ;;  %vm756_vm1 = vweird.f32 %v1018_v30 }
 0x316   :  { %v835_v45 = vpack.c.bf16 %v819_v63, %v819_v63  ;;  %1019 = vrsqrt.f32 %v608_v28  ;;  %vm757_vm3 = vmor %vm755_vm2, %vm756_vm1  ;;  %vm765_vm5 = vweird.f32 %v608_v28 }
 0x317   :  { %v748_v5 = vsel %vm747_vm0, %v1016_v20, %v744_v34  ;;  %v751_v25 = vmul.f32 %v1018_v30, %v750_v36 }
 0x318   :  { %852 = vst.msk [vmem:[#allocation2 + $0x30] sm:$0xf] %vm839_vm8, %v835_v45  ;;  %v782_v38 = vmul.f32 %v748_v5, %v1412_v31 }
 0x319   :  { %v752_v3 = vmul.f32 0.5, %v751_v25 }
 0x31a   :  { %v801_v13 = vmul.f32 %v1437_v4, %v782_v38 }
 0x31b   :  { %v753_v41 = vsub.f32 1.5, %v752_v3 }
 0x31c   :  { %v1020_v42 = vpop.eup %1019  ;;  %v820_v10 = vadd.f32 %v1442_v7, %v801_v13 }
 0x31d   :  { %v754_v44 = vmul.f32 %v1018_v30, %v753_v41  ;;  %v760_v37 = vmul.f32 %v1020_v42, %v608_v28  ;;  %vm766_vm4 = vweird.f32 %v1020_v42 }
 0x31e   :  { %v836_v27 = vpack.c.bf16 %v820_v10, %v820_v10  ;;  %vm767_vm6 = vmor %vm765_vm5, %vm766_vm4 }
 0x31f   :  { %v758_v35 = vsel %vm757_vm3, %v1018_v30, %v754_v44  ;;  %v761_v49 = vmul.f32 %v1020_v42, %v760_v37 }
 0x320   :  { %853 = vst.msk [vmem:[#allocation2 + $0x34] sm:$0xf] %vm839_vm8, %v836_v27  ;;  %v783_v15 = vmul.f32 %v758_v35, %v1419_v33 }
 0x321   :  { %v762_v31 = vmul.f32 0.5, %v761_v49 }
 0x322   :  { %v802_v40 = vmul.f32 %v1437_v4, %v783_v15 }
 0x323   :  { %v763_v52 = vsub.f32 1.5, %v762_v31 }
 0x324   :  { %v821_v50 = vadd.f32 %v1442_v7, %v802_v40 }
 0x325   :  { %v764_v8 = vmul.f32 %v1020_v42, %v763_v52 }
 0x326   :  { %v837_v53 = vpack.c.bf16 %v821_v50, %v821_v50 }
 0x327   :  { %v768_v43 = vsel %vm767_vm6, %v1020_v42, %v764_v8 }
 0x328   :  { %854 = vst.msk [vmem:[#allocation2 + $0x38] sm:$0xf] %vm839_vm8, %v837_v53  ;;  %v784_v55 = vmul.f32 %v768_v43, %v1427_v47 }
 0x32a   :  { %v803_v58 = vmul.f32 %v1437_v4, %v784_v55 }
 0x32c   :  { %v822_v33 = vadd.f32 %v1442_v7, %v803_v58 }
 0x32e   :  { %v838_v59 = vpack.c.bf16 %v822_v33, %v822_v33 }
 0x330   :  { %855 = vst.msk [vmem:[#allocation2 + $0x3c] sm:$0xf] %vm839_vm8, %v838_v59 }
 0x331   :  { %859 = vsyncadd [#allocation3], 896  ;;  %s862_s13 = sshll.u32 %s1533_s9, 4  ;;  %s1048_s14 = smov [#allocation2]   ;;  %s863_s13 = int_to_ptr.hbm [resolvable:$true] %s862_s13 }
 0x332   :  { %s860_s15 = sshll.u32 %s1048_s14, 4  ;;  %s1049_s16 = smov 64   ;;  %s861_s15 = int_to_ptr.vmem [resolvable:$true] %s860_s15 }
 0x333   :  { %s1050_s0 = smov 4  }
 0x334   :  { %868 = dma.vmem_to_hbm [thread:$0]  %s861_s15, 128, %s863_s13, [#allocation3], %s1049_s16, %s1049_s16, %s1050_s0  }
 0x335   :  { %1045 = dma.done.wait [#allocation3], 1024  }
 0x336   :  { %1046 = vsyncadd [#allocation3], 4294966272 }
 0x337   :  { %873 = vsyncpa [#allocation3], 1 }

</bundles_post_ra>
